<compile_context>
chip_gen: v7x
topology: tpu7x:2x2x1
jax: 0.10.0
libtpu: 0.0.40
codegen_flags: <defaults>
</compile_context>

<pallas_src>
import functools

import jax
import jax.numpy as jnp
from jax.experimental import pallas as pl
from jax.experimental.pallas import tpu as pltpu

LEAK = 0.01          # F.leaky_relu default negative_slope
BN_EPS = 1e-5
LANE = 128


def _round_up(x, m):
    return (x + m - 1) // m * m


def _vmem_limit_bytes():
    # Per-generation scoped-VMEM cap: ~3/4 of physical, <= 96 MiB.
    cap = 64 * 1024 * 1024          # conservative fallback (v7x physical)
    try:
        info = pltpu.get_tpu_info()
        cap = int(getattr(info, "vmem_capacity_bytes", cap))
    except Exception:
        pass
    return int(min(cap * 3 // 4, 96 * 1024 * 1024))


VMEM_LIMIT = _vmem_limit_bytes()


def _pick_tm(m):
    # Largest row tile that still leaves >= 2 grid steps (megacore-shardable).
    for tm in (1024, 512, 256, 128, 64, 32, 16, 8):
        if m >= 2 * tm:
            return tm
    return 8


def _pick_th(hs, WP, c3p, cinp, pp, has_sc_conv):
    """Output image rows per tail grid step, sized so per-step VMEM stays v7x-safe."""
    budget = 24 * 1024 * 1024
    def usage(th):
        hh = (th + 2) * WP
        m2 = th * WP
        u = 2 * (hh + 8) * c3p * 2                              # h3 halo tile, 2 DMA slots (bf16)
        u += 2 * (hh + 8) * cinp * 2 if has_sc_conv else 2 * m2 * pp * 2
        u += 2 * m2 * pp * 2                                    # bf16 output blocks (x2 pipeline)
        u += hh * c3p * 2                                       # live kx-shifted operand
        u += 4 * m2 * pp * 4                                    # f32 acc/h2/h1/sc live values
        return u
    th = hs
    while th > 8 and usage(th) > budget:
        th = max(8, (th // 2) // 8 * 8)
    return th


# ------------------------------ Pallas kernels -------------------------------

def _conv1x1_bn_act_kernel(x_ref, w_ref, s_ref, b_ref, o_ref):
    # out = leaky_relu((x @ w) * scale + bias)  -- conv 1x1 + folded BN + activation
    h = jnp.dot(x_ref[...], w_ref[...], preferred_element_type=jnp.float32)
    h = h * s_ref[...] + b_ref[...]
    o_ref[...] = jnp.where(h > 0, h, LEAK * h).astype(o_ref.dtype)


def _dec_tail_kernel(h3f_hbm, x_in, w2_ref, s2_ref, b2_ref, w1_ref, s1_ref, b1_ref,
                     *rest, th, WP, has_sc_conv):
    # Row-tiled fused tail.  The padded, flattened image (pitch WP, row-major) lives in
    # HBM; each grid step manually DMAs (th+2)*WP rows (tile + 2-row halo) into a
    # double-buffered VMEM scratch and prefetches the next row tile of the same image.
    # 3x3/pad=1 conv at flat index j equals  sum_t F[j + ky*WP + kx] @ W_t ; the junk
    # columns (x >= ws) of each output row are discarded by the wrapper.
    if has_sc_conv:
        wsc_ref, ssc_ref, bsc_ref, o_ref, h3buf, xbuf, sem = rest
        xf_hbm = x_in
    else:
        o_ref, h3buf, sem = rest
        xres_ref, xbuf = x_in, None

    b = pl.program_id(0)
    rt = pl.program_id(1)
    n_rt = pl.num_programs(1)
    m2 = th * WP                       # output rows per tile (flat)
    HH = (th + 2) * WP                 # halo'd input rows per tile (flat)
    c3p = h3buf.shape[2]
    cdt = w1_ref.dtype

    def issue(tile_idx, slot):
        tile_idx = jnp.minimum(tile_idx, n_rt - 1)              # defensive clamp
        start = pl.multiple_of(tile_idx * m2, 8)
        pltpu.make_async_copy(h3f_hbm.at[b, pl.ds(start, HH), :],
                              h3buf.at[slot, pl.ds(0, HH), :],
                              sem.at[slot, 0]).start()
        if has_sc_conv:
            pltpu.make_async_copy(xf_hbm.at[b, pl.ds(start, HH), :],
                                  xbuf.at[slot, pl.ds(0, HH), :],
                                  sem.at[slot, 1]).start()

    def wait(slot):
        pltpu.make_async_copy(h3f_hbm.at[b, pl.ds(0, HH), :],
                              h3buf.at[slot, pl.ds(0, HH), :],
                              sem.at[slot, 0]).wait()
        if has_sc_conv:
            pltpu.make_async_copy(xf_hbm.at[b, pl.ds(0, HH), :],
                                  xbuf.at[slot, pl.ds(0, HH), :],
                                  sem.at[slot, 1]).wait()

    @pl.when(rt == 0)                  # first tile of this image: fetch it
    def _():
        issue(0, 0)

    @pl.when(rt + 1 < n_rt)            # prefetch next row tile of the SAME image
    def _():
        issue(rt + 1, (rt + 1) % 2)

    slot = rt % 2
    wait(slot)

    h3t = h3buf.at[slot]
    # zero the 8 slack rows so the (harmless, junk-column-only) over-read is deterministic
    h3t[pl.ds(HH, 8), :] = jnp.zeros((8, c3p), h3buf.dtype)

    def conv9(buf2d, w_ref):
        # 9 taps as 3 kx-shifted slices (2 unaligned relayouts) reused across ky.
        cout = w_ref.shape[2]
        acc = jnp.zeros((m2, cout), jnp.float32)
        for kx in range(3):
            a = buf2d[pl.ds(kx, m2 + 2 * WP), :]
            for ky in range(3):
                acc = acc + jnp.dot(a[ky * WP:ky * WP + m2],
                                    w_ref[ky * 3 + kx],
                                    preferred_element_type=jnp.float32)
        return acc

    # ---- conv2 (3x3, pad 1) + bn2 + leaky_relu ----
    h2 = conv9(h3t, w2_ref) * s2_ref[...] + b2_ref[...]
    h2 = jnp.where(h2 > 0, h2, LEAK * h2)

    # ---- conv1 (1x1) + bn1 ----
    h1 = jnp.dot(h2.astype(cdt), w1_ref[...], preferred_element_type=jnp.float32)
    h1 = h1 * s1_ref[...] + b1_ref[...]

    # ---- shortcut ----
    if has_sc_conv:
        xt = xbuf.at[slot]
        xt[pl.ds(HH, 8), :] = jnp.zeros((8, xbuf.shape[2]), xbuf.dtype)
        sc = conv9(xt, wsc_ref) * ssc_ref[...] + bsc_ref[...]
    else:
        sc = xres_ref[...].astype(jnp.float32)

    out = h1 + sc
    o_ref[...] = jnp.where(out > 0, out, LEAK * out).astype(o_ref.dtype)


# ------------------------------ Pallas wrappers -------------------------------

def conv1x1_bn_act(x, w, scale, bias, *, out_dtype):
    m, k = x.shape
    cout = w.shape[1]
    tm = _pick_tm(m)
    m_pad = _round_up(m, tm)
    if m_pad != m:
        x = jnp.pad(x, ((0, m_pad - m), (0, 0)))
    flops = 2 * m_pad * k * cout
    bytes_accessed = (m_pad * k + k * cout + m_pad * cout) * 2 + 2 * cout * 4
    out = pl.pallas_call(
        _conv1x1_bn_act_kernel,
        out_shape=jax.ShapeDtypeStruct((m_pad, cout), out_dtype),
        grid=(m_pad // tm,),
        in_specs=[
            pl.BlockSpec((tm, k), lambda i: (i, 0)),
            pl.BlockSpec((k, cout), lambda i: (0, 0)),
            pl.BlockSpec((1, cout), lambda i: (0, 0)),
            pl.BlockSpec((1, cout), lambda i: (0, 0)),
        ],
        out_specs=pl.BlockSpec((tm, cout), lambda i: (i, 0)),
        compiler_params=pltpu.CompilerParams(
            dimension_semantics=("parallel",),
            vmem_limit_bytes=VMEM_LIMIT),
        cost_estimate=pl.CostEstimate(flops=int(flops), transcendentals=0,
                                      bytes_accessed=int(bytes_accessed)),
    )(x, w, scale, bias)
    return out[:m] if m_pad != m else out


def dec_tail(h3f, x_in, weights, *, th, WP, n_rt, has_sc_conv, out_dtype):
    w2, s2, b2, w1, s1, b1 = weights[:6]
    n, _, c3p = h3f.shape
    pp = w1.shape[1]
    m2 = th * WP
    HH = (th + 2) * WP

    def full_spec(arr):
        nd = arr.ndim
        return pl.BlockSpec(arr.shape, lambda b, rt, _nd=nd: (0,) * _nd)

    in_specs = [pl.BlockSpec(memory_space=pl.ANY)]              # h3f: HBM, manual DMA
    if has_sc_conv:
        in_specs.append(pl.BlockSpec(memory_space=pl.ANY))      # x: HBM, manual DMA
    else:
        in_specs.append(pl.BlockSpec((None, m2, pp), lambda b, rt: (b, rt, 0)))

    small = [w2, s2, b2, w1, s1, b1]
    if has_sc_conv:
        wsc, ssc, bsc = weights[6:]
        small += [wsc, ssc, bsc]
    in_specs += [full_spec(a) for a in small]
    args = [h3f, x_in] + small

    scratch = [pltpu.VMEM((2, HH + 8, c3p), h3f.dtype)]
    if has_sc_conv:
        scratch.append(pltpu.VMEM((2, HH + 8, x_in.shape[-1]), x_in.dtype))
    scratch.append(pltpu.SemaphoreType.DMA((2, 2)))

    kernel = functools.partial(_dec_tail_kernel, th=th, WP=WP, has_sc_conv=has_sc_conv)

    flops = 2 * m2 * c3p * pp * 9 + 2 * m2 * pp * pp
    if has_sc_conv:
        flops += 2 * m2 * x_in.shape[-1] * pp * 9
    flops *= n * n_rt
    bytes_accessed = (h3f.size * h3f.dtype.itemsize
                      + x_in.size * x_in.dtype.itemsize
                      + sum(a.size * a.dtype.itemsize for a in small)
                      + n * n_rt * m2 * pp * jnp.dtype(out_dtype).itemsize)

    return pl.pallas_call(
        kernel,
        out_shape=jax.ShapeDtypeStruct((n, n_rt * m2, pp), out_dtype),
        grid=(n, n_rt),
        in_specs=in_specs,
        out_specs=pl.BlockSpec((None, m2, pp), lambda b, rt: (b, rt, 0)),
        scratch_shapes=scratch,
        compiler_params=pltpu.CompilerParams(
            dimension_semantics=("parallel", "arbitrary"),
            vmem_limit_bytes=VMEM_LIMIT),
        cost_estimate=pl.CostEstimate(flops=int(flops), transcendentals=0,
                                      bytes_accessed=int(bytes_accessed)),
    )(*args)


# ---------------------- one-time parameter preparation ------------------------

def prepare_params(params, *, in_planes, planes, stride,
                   compute_dtype=jnp.bfloat16):
    """Hoisted out of the forward path: transposes, BN folding, channel padding, casts."""
    c3 = 2 * planes
    cin_p = _round_up(in_planes, LANE)
    c3_p = _round_up(c3, LANE)
    p_p = _round_up(planes, LANE)
    has_sc_conv = (stride != 1) or (in_planes != planes)

    def fold_bn(stats, conv_bias=None):
        g, b, m, v = stats
        scale = g / jnp.sqrt(v + BN_EPS)
        bias = (b - m * scale) if conv_bias is None else (b + (conv_bias - m) * scale)
        return scale, bias

    def pad_vec(v, c_pad):
        return jnp.pad(v, (0, c_pad - v.shape[0])).reshape(1, c_pad).astype(jnp.float32)

    def pad_mat(w, r_pad, c_pad):
        return jnp.pad(w, ((0, r_pad - w.shape[0]),
                           (0, c_pad - w.shape[1]))).astype(compute_dtype)

    def pad_conv3x3(w, cin, cout, cin_pad, cout_pad):
        # [O, I, 3, 3] -> [ky, kx, I, O] -> [9, cin_pad, cout_pad]
        w = jnp.transpose(w, (2, 3, 1, 0))
        w = jnp.pad(w, ((0, 0), (0, 0), (0, cin_pad - cin), (0, cout_pad - cout)))
        return w.reshape(9, cin_pad, cout_pad).astype(compute_dtype)

    prep = {"in_planes": in_planes, "planes": planes, "stride": stride,
            "cin_p": cin_p, "c3_p": c3_p, "p_p": p_p,
            "has_sc_conv": has_sc_conv, "compute_dtype": compute_dtype}

    s3, b3 = fold_bn(params["bn3"])
    prep["w3"] = pad_mat(jnp.transpose(params["w3"][:, :, 0, 0]), cin_p, c3_p)
    prep["s3"], prep["b3"] = pad_vec(s3, c3_p), pad_vec(b3, c3_p)

    s2, b2 = fold_bn(params["bn2"], params["b2"])
    prep["w2"] = pad_conv3x3(params["w2"], c3, planes, c3_p, p_p)
    prep["s2"], prep["b2"] = pad_vec(s2, p_p), pad_vec(b2, p_p)

    s1, b1 = fold_bn(params["bn1"])
    prep["w1"] = pad_mat(jnp.transpose(params["w1"][:, :, 0, 0]), p_p, p_p)
    prep["s1"], prep["b1"] = pad_vec(s1, p_p), pad_vec(b1, p_p)

    if has_sc_conv:
        ssc, bsc = fold_bn(params["bnsc"], params["bsc"])
        prep["wsc"] = pad_conv3x3(params["wsc"], in_planes, planes, cin_p, p_p)
        prep["ssc"], prep["bsc"] = pad_vec(ssc, p_p), pad_vec(bsc, p_p)
    else:
        assert cin_p == p_p  # identity shortcut requires in_planes == planes
    return prep


# ------------------------------ layout glue ------------------------------------

def _up_pad_flatten(img, s, WP, HP, dtype):
    # (n, h, w, C) -> nearest upsample x s -> zero-pad to (HP, WP) -> flatten rows.
    n, h, w, C = img.shape
    if s != 1:
        img = jnp.broadcast_to(img[:, :, None, :, None, :],
                               (n, h, s, w, s, C)).reshape(n, h * s, w * s, C)
    hs, ws = h * s, w * s
    img = jnp.pad(img, ((0, 0), (1, HP - hs - 1), (1, WP - ws - 1), (0, 0)))
    return img.reshape(n, HP * WP, C).astype(dtype)


def _flatten_resid(x_nhwc, WP, hs_pad, dtype):
    # identity residual, laid out to match the output's flat (pitch WP) layout.
    n, h, w, C = x_nhwc.shape
    xr = jnp.pad(x_nhwc, ((0, 0), (0, hs_pad - h), (0, WP - w), (0, 0)))
    return xr.reshape(n, hs_pad * WP, C).astype(dtype)


# ------------------------------ module forward --------------------------------

def bottleneck_dec_forward(x_nchw, prep, *, tile_rows=None):
    in_planes, planes, s = prep["in_planes"], prep["planes"], prep["stride"]
    cin_p, c3_p, p_p = prep["cin_p"], prep["c3_p"], prep["p_p"]
    cdt = prep["compute_dtype"]
    has_sc_conv = prep["has_sc_conv"]

    n, c, h, w = x_nchw.shape
    assert c == in_planes
    x = jnp.transpose(x_nchw, (0, 2, 3, 1)).astype(jnp.float32)        # NHWC
    x = jnp.pad(x, ((0, 0), (0, 0), (0, 0), (0, cin_p - in_planes)))   # lane-pad channels

    # --- stage 1: conv3 (1x1) + bn3 + leaky_relu (row-tiled channel matmul) ---
    h3 = conv1x1_bn_act(x.reshape(n * h * w, cin_p).astype(cdt),
                        prep["w3"], prep["s3"], prep["b3"], out_dtype=cdt)
    h3 = h3.reshape(n, h, w, c3_p)

    # --- row-tile geometry -----------------------------------------------------
    hs, ws = h * s, w * s
    WP = _round_up(ws + 2, 8)                       # padded row pitch (sublane-aligned)
    th = tile_rows if tile_rows is not None else _pick_th(hs, WP, c3_p, cin_p, p_p,
                                                          has_sc_conv)
    th = max(1, min(int(th), hs))
    if th >= 2 and th % 2:
        th -= 1                                     # keep th*WP a multiple of 16 (bf16)
    n_rt = -(-hs // th)
    hs_pad = n_rt * th
    HP = hs_pad + 2

    # --- layout glue: nearest upsample, zero pad, flatten ----------------------
    # TODO(synk): the upsample/pad/flatten still materialize one fused XLA pass per
    # image; fully in-kernel nearest upsample (stride-0 broadcast loads) not implemented.
    h3f = _up_pad_flatten(h3, s, WP, HP, cdt)
    if has_sc_conv:
        x_in = _up_pad_flatten(x, s, WP, HP, cdt)
        weights = (prep["w2"], prep["s2"], prep["b2"],
                   prep["w1"], prep["s1"], prep["b1"],
                   prep["wsc"], prep["ssc"], prep["bsc"])
    else:
        x_in = _flatten_resid(x, WP, hs_pad, cdt)   # bf16 residual; add stays f32 in-kernel
        weights = (prep["w2"], prep["s2"], prep["b2"],
                   prep["w1"], prep["s1"], prep["b1"])

    # --- stage 2: fused conv2+bn2+lrelu, conv1+bn1, shortcut, add, lrelu -------
    out = dec_tail(h3f, x_in, weights, th=th, WP=WP, n_rt=n_rt,
                   has_sc_conv=has_sc_conv, out_dtype=cdt)
    out = out.reshape(n, hs_pad, WP, p_p)[:, :hs, :ws, :planes]  # drop junk cols/pad
    return jnp.transpose(out, (0, 3, 1, 2)).astype(jnp.float32)  # NCHW


# ------------------------------ pure-JAX reference -----------------------------

def ref_forward(x, params, *, in_planes, planes, stride):
    hp = jax.lax.Precision.HIGHEST

    def bn(y, stats):
        g, b, m, v = stats
        inv = (g / jnp.sqrt(v + BN_EPS))[None, :, None, None]
        return (y - m[None, :, None, None]) * inv + b[None, :, None, None]

    def conv(y, wgt, bias, pad):
        out = jax.lax.conv_general_dilated(
            y, wgt, (1, 1), [(pad, pad), (pad, pad)],
            dimension_numbers=("NCHW", "OIHW", "NCHW"), precision=hp)
        if bias is not None:
            out = out + bias[None, :, None, None]
        return out

    def up(y):
        if stride == 1:
            return y
        return jnp.repeat(jnp.repeat(y, stride, axis=2), stride, axis=3)

    has_sc = (stride != 1) or (in_planes != planes)
    out = jax.nn.leaky_relu(bn(conv(x, params["w3"], None, 0), params["bn3"]), LEAK)
    out = up(out) if has_sc else out
    out = jax.nn.leaky_relu(bn(conv(out, params["w2"], params["b2"], 1), params["bn2"]), LEAK)
    out = bn(conv(out, params["w1"], None, 0), params["bn1"])
    sc = bn(conv(up(x), params["wsc"], params["bsc"], 1), params["bnsc"]) if has_sc else x
    return jax.nn.leaky_relu(out + sc, LEAK)


# ----------------------------------- main --------------------------------------

def make_params(key, in_planes, planes, stride):
    c3 = 2 * planes
    ks = jax.random.split(key, 12)
    has_sc = (stride != 1) or (in_planes != planes)

    def bn_stats(k, ch):
        k1, k2, k3, k4 = jax.random.split(k, 4)
        return (1.0 + 0.1 * jax.random.normal(k1, (ch,), jnp.float32),
                0.1 * jax.random.normal(k2, (ch,), jnp.float32),
                0.1 * jax.random.normal(k3, (ch,), jnp.float32),
                jax.random.uniform(k4, (ch,), jnp.float32, 0.5, 1.5))

    params = {
        "w3": 0.2 * jax.random.normal(ks[0], (c3, in_planes, 1, 1), jnp.float32),
        "bn3": bn_stats(ks[1], c3),
        "w2": 0.2 * jax.random.normal(ks[2], (planes, c3, 3, 3), jnp.float32),
        "b2": 0.1 * jax.random.normal(ks[3], (planes,), jnp.float32),
        "bn2": bn_stats(ks[4], planes),
        "w1": 0.2 * jax.random.normal(ks[5], (planes, planes, 1, 1), jnp.float32),
        "bn1": bn_stats(ks[6], planes),
    }
    if has_sc:
        params["wsc"] = 0.2 * jax.random.normal(ks[7], (planes, in_planes, 3, 3), jnp.float32)
        params["bsc"] = 0.1 * jax.random.normal(ks[8], (planes,), jnp.float32)
        params["bnsc"] = bn_stats(ks[9], planes)
    return params


def _run_case(key, *, n, in_planes, planes, stride, h, w, tile_rows=None):
    kx, kp = jax.random.split(key)
    x = jax.random.normal(kx, (n, in_planes, h, w), jnp.float32)    # NCHW like PyTorch
    params = make_params(kp, in_planes, planes, stride)
    prep = prepare_params(params, in_planes=in_planes, planes=planes, stride=stride)

    out = jax.block_until_ready(bottleneck_dec_forward(x, prep, tile_rows=tile_rows))
    ref = jax.block_until_ready(ref_forward(x, params, in_planes=in_planes,
                                            planes=planes, stride=stride))
    assert out.shape == ref.shape == (n, planes, h * stride, w * stride), (out.shape, ref.shape)
    err = float(jnp.max(jnp.abs(out - ref)))
    scale = float(jnp.max(jnp.abs(ref))) + 1e-6
    # bf16 matmul operands / bf16 output store vs HIGHEST-precision f32 reference.
    assert err <= 0.05 * scale, f"mismatch vs reference: max abs err {err} (scale {scale})"
    return err


if __name__ == "__main__":
    key = jax.random.PRNGKey(0)
    k1, k2, k3 = jax.random.split(key, 3)
    # decoder block: 2x nearest upsample + conv shortcut; forces the multi-row-tile path
    _run_case(k1, n=2, in_planes=4, planes=8, stride=2, h=16, w=16, tile_rows=12)
    # identity shortcut path (stride=1, in_planes == planes); two row tiles
    _run_case(k2, n=2, in_planes=8, planes=8, stride=1, h=16, w=16, tile_rows=8)
    # conv-shortcut path with auto tile choice (single row tile per image)
    _run_case(k3, n=1, in_planes=4, planes=8, stride=2, h=16, w=16, tile_rows=None)
    print("KERNEL_OK")
</pallas_src>

<mosaic_0001>
module attributes {stable_mosaic.version = 11 : i64} {
  func.func @_conv1x1_bn_act_kernel(%arg0: i32, %arg1: memref<256x128xbf16, #tpu.memory_space<vmem>>, %arg2: memref<128x128xbf16, #tpu.memory_space<vmem>>, %arg3: memref<1x128xf32, #tpu.memory_space<vmem>>, %arg4: memref<1x128xf32, #tpu.memory_space<vmem>>, %arg5: memref<256x128xbf16, #tpu.memory_space<vmem>>) attributes {dimension_semantics = [#tpu.dimension_semantics<parallel>], iteration_bounds = array<i64: 2>, scalar_prefetch = 0 : i64, scratch_operands = 0 : i64, tpu.core_type = #tpu.core_type<tc>, window_params = [{transform_indices = @transform_0, window_bounds = array<i64: 256, 128>}, {pipeline_mode = #tpu.pipeline_mode<synchronous>, transform_indices = @transform_1, window_bounds = array<i64: 128, 128>}, {pipeline_mode = #tpu.pipeline_mode<synchronous>, transform_indices = @transform_2, window_bounds = array<i64: 1, 128>}, {pipeline_mode = #tpu.pipeline_mode<synchronous>, transform_indices = @transform_3, window_bounds = array<i64: 1, 128>}, {transform_indices = @transform_4, window_bounds = array<i64: 256, 128>}]} {
    %c0 = arith.constant 0 : index
    %c0_0 = arith.constant 0 : index
    %0 = vector.load %arg1[%c0, %c0_0] : memref<256x128xbf16, #tpu.memory_space<vmem>>, vector<256x128xbf16>
    %c0_1 = arith.constant 0 : index
    %c0_2 = arith.constant 0 : index
    %1 = vector.load %arg2[%c0_1, %c0_2] : memref<128x128xbf16, #tpu.memory_space<vmem>>, vector<128x128xbf16>
    %cst = arith.constant dense<0.000000e+00> : vector<256x128xf32>
    %2 = tpu.matmul %0, %1, %cst {dimension_numbers = #tpu.dot_dimension_numbers<[1], [0], [0], [1], [0, 0, 1, 1], [], []>} : vector<256x128xbf16>, vector<128x128xbf16>, vector<256x128xf32> -> vector<256x128xf32>
    %c0_3 = arith.constant 0 : index
    %c0_4 = arith.constant 0 : index
    %3 = vector.load %arg3[%c0_3, %c0_4] : memref<1x128xf32, #tpu.memory_space<vmem>>, vector<1x128xf32>
    %4 = vector.broadcast %3 : vector<1x128xf32> to vector<256x128xf32>
    %5 = arith.mulf %2, %4 : vector<256x128xf32>
    %c0_5 = arith.constant 0 : index
    %c0_6 = arith.constant 0 : index
    %6 = vector.load %arg4[%c0_5, %c0_6] : memref<1x128xf32, #tpu.memory_space<vmem>>, vector<1x128xf32>
    %7 = vector.broadcast %6 : vector<1x128xf32> to vector<256x128xf32>
    %8 = arith.addf %5, %7 : vector<256x128xf32>
    %cst_7 = arith.constant 0.000000e+00 : f32
    %9 = vector.broadcast %cst_7 : f32 to vector<256x128xf32>
    %10 = arith.cmpf ogt, %8, %9 : vector<256x128xf32>
    %cst_8 = arith.constant 0.00999999977 : f32
    %11 = vector.broadcast %cst_8 : f32 to vector<256x128xf32>
    %12 = arith.mulf %11, %8 : vector<256x128xf32>
    %13 = arith.select %10, %8, %12 : vector<256x128xi1>, vector<256x128xf32>
    %14 = arith.truncf %13 : vector<256x128xf32> to vector<256x128xbf16>
    %c0_9 = arith.constant 0 : index
    %c0_10 = arith.constant 0 : index
    %15 = vector.load %arg5[%c0_9, %c0_10] : memref<256x128xbf16, #tpu.memory_space<vmem>>, vector<256x128xbf16>
    tpu.vector_store %arg5[%c0_9, %c0_10], %14 {strides = array<i32>} : memref<256x128xbf16, #tpu.memory_space<vmem>>, vector<256x128xbf16>,
    return
  }
  func.func @transform_0(%arg0: i32) -> (i32, i32) {
    %c0_i32 = arith.constant 0 : i32
    %c0_i32_0 = arith.constant 0 : i32
    return %arg0, %c0_i32 : i32, i32
  }
  func.func @transform_1(%arg0: i32) -> (i32, i32) {
    %c0_i32 = arith.constant 0 : i32
    %c0_i32_0 = arith.constant 0 : i32
    %c0_i32_1 = arith.constant 0 : i32
    return %c0_i32, %c0_i32_0 : i32, i32
  }
  func.func @transform_2(%arg0: i32) -> (i32, i32) {
    %c0_i32 = arith.constant 0 : i32
    %c0_i32_0 = arith.constant 0 : i32
    %c0_i32_1 = arith.constant 0 : i32
    return %c0_i32, %c0_i32_0 : i32, i32
  }
  func.func @transform_3(%arg0: i32) -> (i32, i32) {
    %c0_i32 = arith.constant 0 : i32
    %c0_i32_0 = arith.constant 0 : i32
    %c0_i32_1 = arith.constant 0 : i32
    return %c0_i32, %c0_i32_0 : i32, i32
  }
  func.func @transform_4(%arg0: i32) -> (i32, i32) {
    %c0_i32 = arith.constant 0 : i32
    %c0_i32_0 = arith.constant 0 : i32
    return %arg0, %c0_i32 : i32, i32
  }
}

</mosaic_0001>

<bundles_post_ra>
// kernel: tpu_custom_call.1
= control target key start
LH: loop header
LB: loop body
LE: loop exit
PB: predicated region body
PF: predicated region fallthrough
CT: control target
= control target key end

     0   :  { %9 = vsyncpa [#allocation3], 0  ;;  %s1881_s0 = inlined_call_operand.hbm [shape: bf16[512,128], index: 0, kind: input, shape index: {}]   ;;  %s1882_s1 = inlined_call_operand.hbm [shape: bf16[128,128], index: 1, kind: input, shape index: {}]   ;;  %s1883_s2 = inlined_call_operand.vmem [shape: f32[1,128], index: 2, kind: input, shape index: {}]   ;;  %s1884_s3 = inlined_call_operand.vmem [shape: f32[1,128], index: 3, kind: input, shape index: {}]   ;;  %s1885_s4 = inlined_call_operand.hbm [shape: bf16[512,128], index: 4, kind: output, shape index: {}]  }
   0x1   :  { %11 = vsyncpa [#allocation3 + $0x1], 0 }
   0x2   :  { %12 = vsyncpa [#allocation6], 0 }
   0x3   :  { %13 = vsyncpa [#allocation4], 0 }
   0x4   :  { %15 = vsyncpa [#allocation4 + $0x1], 0  ;;  %s1556_s15 = smov 0   ;;  %s1558_s16 = smov 0  }
   0x5   :  { %s1560_s17 = smov 0   ;;  %s1562_s18 = smov 0  }
   0x6 LB: > { %s1577_s19 = sadd.s32 4294967295, %s1522_s18   ;;  %s1018_s20 = sadd.s32 4294967294, %s1522_s18   ;;  %s1522_s18 = sphi %s1562_s18, %s1905_s18   ;;  %s1518_s17 = sphi %s1560_s17, %s1904_s17   ;;  %s1514_s16 = sphi %s1558_s16, %s1903_s16   ;;  %s1510_s15 = sphi %s1556_s15, %s1902_s15  }
   0x7   : > { %p41_p0 = scmp.ne.s32.totalorder %s1514_s16, %s1510_s15  ;;  %p1886_p1 = scmp.eq.s32.totalorder %s1577_s19, 0 }
   0x8   : > { %p134_p3 = scmp.eq.s32.totalorder %s1018_s20, 1  ;;  %p1019_p5 = scmp.ge.s32.totalorder %s1522_s18, 1 }
   0x9   : > { %p1586_p4 = por %p1886_p1, %p41_p0  ;;  %p141_p7 = scmp.lt.s32.totalorder %s1522_s18, 3 }
   0xa   : > { %p1591_p6 = por %p134_p3, %p41_p0  ;;  %s1524_s24 = smov [#allocation5]  }
   0xb   : > { %s1889_s21 = scalar_select %p1586_p4, 1, 0 }
   0xc   : > { %s1890_s22 = scalar_select %p1591_p6, 1, 0 }
   0xd   : > { %p1596_p8 = pnand %p1019_p5, %p141_p7  ;;  %s153_s25 = sshll.u32 %s1524_s24, 4  ;;  %s1600_s25 = int_to_ptr.vmem [resolvable:$true] %s153_s25 }
   0xe   : > { %s1612_s27 = sadd.s32 1, %s1522_s18   ;;  %s28_s28 = sadd.s32 1, %s1518_s17 }
   0xf   : > { %s1891_s23 = scalar_select %p1596_p8, 1, 0 }
  0x10   : > { %p1317_p9 = pneg %p1596_p8  ;;  %s25_s29 = ssub.s32 %s1522_s18, %s1612_s27 }
  0x11   : > { %s1394_s6 = scalar_lea.hbm %s1882_s1, 1024 }
  0x12   : > { %p1607_p11 = pnand %p1317_p9, %p1886_p1  ;;  %p1395_p12 = scmp.ne.s32.totalorder %s1882_s1, %s1394_s6 }
  0x13   : > { %p1401_p5 = scmp.lt.u32.totalorder %s1394_s6, %s1882_s1 }
  0x14   : > { %p1396_p13 = pneg %p1607_p11 }
  0x16   : > { %p1397_p0 = pnand %p1396_p13, %p1395_p12 }
  0x18   : > { %p1398_p3 = pneg %p1397_p0 }
  0x1a   : > { %p1403_p7 = pnand %p1401_p5, %p1398_p3 }
  0x1c   : > { %1406 = shalt.err (!%p1403_p7)
}
  0x1d   : > { %s1407_s11 = scalar_lea.vmem %s1600_s25, 1024  ;;  %p1415_p2 = scmp.lt.s32.totalorder %s1600_s25, %s1600_s25 }
  0x1e   : > { %p1408_p9 = scmp.ne.s32.totalorder %s1600_s25, %s1407_s11  ;;  %p1416_p6 = scmp.lt.s32.totalorder %s1407_s11, %s1407_s11 }
  0x20   : > { %p1410_p10 = pnand %p1408_p9, %p1396_p13  ;;  %p1417_p4 = por %p1416_p6, %p1415_p2 }
  0x22   : > { %p1411_p1 = pneg %p1410_p10 }
  0x24   : > { %p1418_p8 = pnand %p1417_p4, %p1411_p1 }
  0x26   : > { %1421 = shalt.err (!%p1418_p8)
}
  0x27   : > { %s1525_s12 = smov 64   ;;  %s1526_s13 = smov 4  }
  0x28   : > { %1320 = dma.hbm_to_vmem [thread:$0]  (!%p1607_p11), %s1882_s1, 1024, %s1600_s25, [#allocation6], %s1525_s12, %s1525_s12, %s1526_s13  }
  0x29   : > { %p26_p1 = scmp.eq.s32.totalorder %s25_s29, 0  ;;  %p35_p2 = scmp.ne.s32.totalorder %s1518_s17, %s1514_s16 }
  0x2a   : > { %p36_p4 = scmp.eq.s32.totalorder %s1522_s18, 0  ;;  %p1330_p6 = scmp.lt.s32.totalorder %s1522_s18, 2 }
  0x2b   : > { %s1646_s24 = scalar_select %p26_p1, %s1518_s17, %s28_s28  }
  0x2c   : > { %p37_p8 = por %p36_p4, %p35_p2  ;;  %p1893_p10 = scmp.eq.s32.totalorder %s1577_s19, 1 }
  0x2d   : > { %s173_s26 = sand.u32 1, %s1518_s17   ;;  %s1092_s5 = sshll.u32 %s1522_s18, 11 }
  0x2e   : > { %p1650_p12 = por %p1893_p10, %p35_p2  ;;  %s1022_s6 = sshll.u32 %s173_s26, 7 }
  0x2f   : > { %s1659_s9 = scalar_lea.hbm %s1881_s0, %s1092_s5  ;;  %s177_s25 = scalar_lea.vmem [#allocation2], %s1022_s6 }
  0x30   : > { %s184_s28 = sshll.u32 %s177_s25, 4  ;;  %p1661_p11 = pnand %p1330_p6, %p37_p8  ;;  %s1665_s28 = int_to_ptr.vmem [resolvable:$true] %s184_s28 }
  0x31   : > { %s1667_s10 = scalar_lea.sflag [#allocation3], %s173_s26  ;;  %s1422_s11 = scalar_lea.hbm %s1659_s9, 2048 }
  0x32   : > { %p1423_p13 = scmp.ne.s32.totalorder %s1659_s9, %s1422_s11  ;;  %p1424_p0 = pneg %p1661_p11 }
  0x33   : > { %s1427_s5 = scalar_lea.hbm %s1881_s0, 4096  ;;  %p1428_p7 = scmp.lt.u32.totalorder %s1659_s9, %s1881_s0 }
  0x34   : > { %p1425_p3 = pnand %p1424_p0, %p1423_p13  ;;  %p1429_p9 = scmp.lt.u32.totalorder %s1427_s5, %s1422_s11 }
  0x35   : > { %p1431_p2 = scmp.lt.u32.totalorder %s1422_s11, %s1659_s9 }
  0x36   : > { %p1426_p5 = pneg %p1425_p3  ;;  %p1430_p1 = por %p1429_p9, %p1428_p7 }
  0x38   : > { %p1432_p4 = por %p1431_p2, %p1430_p1 }
  0x3a   : > { %p1433_p6 = pnand %p1432_p4, %p1426_p5 }
  0x3c   : > { %1436 = shalt.err (!%p1433_p6)
}
  0x3d   : > { %s1437_s26 = scalar_lea.vmem %s1665_s28, 2048  ;;  %s1527_s8 = smov [#allocation2]  }
  0x3e   : > { %p1438_p8 = scmp.ne.s32.totalorder %s1665_s28, %s1437_s26  ;;  %s1442_s25 = sshll.u32 %s1527_s8, 4  ;;  %s1443_s25 = int_to_ptr.vmem [resolvable:$false] %s1442_s25 }
  0x3f   : > { %s1444_s14 = scalar_lea.vmem %s1443_s25, 4096  ;;  %p1445_p3 = scmp.lt.s32.totalorder %s1665_s28, %s1443_s25 }
  0x40   : > { %p1440_p10 = pnand %p1438_p8, %p1424_p0  ;;  %p1446_p7 = scmp.lt.s32.totalorder %s1444_s14, %s1437_s26 }
  0x42   : > { %p1441_p13 = pneg %p1440_p10  ;;  %p1447_p9 = por %p1446_p7, %p1445_p3 }
  0x44   : > { %p1448_p1 = pnand %p1447_p9, %p1441_p13 }
  0x46   : > { %1451 = shalt.err (!%p1448_p1)
}
  0x47   : > { %1324 = dma.hbm_to_vmem [thread:$0]  (!%p1661_p11), %s1659_s9, 2048, %s1665_s28, %s1667_s10, %s1525_s12, %s1525_s12, %s1526_s13  }
  0x48   : > { %p1896_p0 = scmp.ne.s32.totalorder %s1891_s23, 0 }
  0x49   : > { %s1701_s11 = sand.u32 (!%p1896_p0), 1, %s1514_s16   ;;  %p1897_p5 = scmp.ne.s32.totalorder (!%p1896_p0), %s1889_s21, 0 }
  0x4a   : > { %196 = sbr.rel (%p1896_p0) target bundleno = 394 (0x18a), region = 36  ;;  %s1026_s20 = sshll.u32 (!%p1896_p0), %s1701_s11, 7 }
  0x4b   : > { %s199_s5 = scalar_lea.sflag (!%p1896_p0), [#allocation3], %s1701_s11  ;;  %s1707_s29 = scalar_lea.vmem (!%p1896_p0), [#allocation2], %s1026_s20 }
  0x51   : > { %1497 = dma.done.wait (%p1897_p5), %s199_s5, 2048  }
  0x52   : > { %1499 = vsyncadd (%p1897_p5), %s199_s5, 4294965248  ;;  %p1898_p11 = scmp.eq.s32.totalorder %s1577_s19, 0 }
  0x54   : > { %1501 = dma.done.wait (%p1898_p11), [#allocation6], 1024   ;;  %p1899_p2 = pmov %p1898_p11 }
  0x55   : > { %v1370_v0 = vld [vmem:[#allocation5] sm:$0xff]   ;;  %v1371_v1 = vld [vmem:[#allocation5 + $0x8] sm:$0xff]   ;;  %v1372_v2 = vld [vmem:[#allocation5 + $0x10] sm:$0xff]   ;;  %s1765_s9 = scalar_lea.vmem [#allocation7], %s1026_s20  ;;  %s1125_s28 = sshll.u32 %s1577_s19, 11 }
  0x56   : > { %1503 = vsyncadd (%p1899_p2), [#allocation6], 4294966272  ;;  %1245 = vmatprep.subr.bf16.mxu0 %v1370_v0  ;;  %1293 = vmatprep.subr.bf16.mxu1 %v1370_v0  ;;  %v1373_v3 = vld [vmem:[#allocation5 + $0x18] sm:$0xff]   ;;  %v1378_v4 = vld [vmem:[%s1707_s29] sm:$0xff]   ;;  %s935_s10 = sshll.u32 %s1765_s9, 4  ;;  %s1833_s26 = scalar_lea.hbm %s1885_s4, %s1125_s28  ;;  %s1835_s10 = int_to_ptr.vmem [resolvable:$true] %s935_s10 }
  0x57   : > { %1246 = vmatpush3.bf16.msra.mxu0 %v1370_v0  ;;  %1301 = vmatpush3.bf16.msra.mxu1 %v1370_v0  ;;  %v1379_v5 = vld [vmem:[%s1707_s29 + $0x40] sm:$0xff]   ;;  %v1375_v7 = vld [vmem:[#allocation5 + $0x28] sm:$0xff]   ;;  %v1376_v8 = vld [vmem:[#allocation5 + $0x30] sm:$0xff]   ;;  %s922_s19 = scalar_lea.sflag [#allocation4], %s1701_s11  ;;  %s1452_s8 = scalar_lea.vmem %s1835_s10, 2048 }
  0x58   : > { %1247 = vmatprep.subr.bf16.mxu0 %v1371_v1  ;;  %1294 = vmatprep.subr.bf16.mxu1 %v1371_v1  ;;  %v1374_v6 = vld [vmem:[#allocation5 + $0x20] sm:$0xff]   ;;  %v1377_v9 = vld [vmem:[#allocation5 + $0x38] sm:$0xff]   ;;  %v1380_v10 = vld [vmem:[%s1707_s29 + $0x8] sm:$0xff]   ;;  %p1453_p4 = scmp.ne.s32.totalorder %s1835_s10, %s1452_s8  ;;  %s1528_s25 = smov [#allocation7]  }
  0x59   : > { %1261 = vmatprep.mubr.bf16.mxu0 %v1378_v4  ;;  %1277 = vmatprep.mubr.bf16.mxu1 %v1379_v5  ;;  %v1381_v11 = vld [vmem:[%s1707_s29 + $0x48] sm:$0xff]   ;;  %v1382_v12 = vld [vmem:[%s1707_s29 + $0x10] sm:$0xff]   ;;  %v1384_v14 = vld [vmem:[%s1707_s29 + $0x18] sm:$0xff]   ;;  %s1456_s14 = sshll.u32 %s1528_s25, 4  ;;  %s1457_s14 = int_to_ptr.vmem [resolvable:$false] %s1456_s14 }
  0x5a   : > { %v1383_v13 = vld [vmem:[%s1707_s29 + $0x50] sm:$0xff]   ;;  %v1385_v15 = vld [vmem:[%s1707_s29 + $0x58] sm:$0xff]   ;;  %v1386_v16 = vld [vmem:[%s1707_s29 + $0x20] sm:$0xff]   ;;  %p1454_p6 = pnand %p1453_p4, %p1650_p12  ;;  %s1458_s20 = scalar_lea.vmem %s1457_s14, 4096 }
  0x5b   : > { %1248 = vmatpush3.bf16.msra.mxu0 %v1371_v1  ;;  %1302 = vmatpush3.bf16.msra.mxu1 %v1371_v1  ;;  %v1387_v17 = vld [vmem:[%s1707_s29 + $0x60] sm:$0xff]   ;;  %v1388_v18 = vld [vmem:[%s1707_s29 + $0x28] sm:$0xff]   ;;  %v1390_v20 = vld [vmem:[%s1707_s29 + $0x30] sm:$0xff]   ;;  %p1459_p10 = scmp.lt.s32.totalorder %s1835_s10, %s1457_s14  ;;  %p1460_p13 = scmp.lt.s32.totalorder %s1458_s20, %s1452_s8 }
  0x5c   : > { %1249 = vmatprep.subr.bf16.mxu0 %v1372_v2  ;;  %1295 = vmatprep.subr.bf16.mxu1 %v1372_v2  ;;  %v1389_v19 = vld [vmem:[%s1707_s29 + $0x68] sm:$0xff]   ;;  %v1391_v21 = vld [vmem:[%s1707_s29 + $0x70] sm:$0xff]   ;;  %v1392_v22 = vld [vmem:[%s1707_s29 + $0x38] sm:$0xff]   ;;  %p1455_p8 = pneg %p1454_p6 }
  0x5d   : > { %v1393_v23 = vld [vmem:[%s1707_s29 + $0x78] sm:$0xff]   ;;  %v1736_v24 = vld [vmem:[%s1883_s2] ss:$0 sm:$0xff]  ;;  %p1461_p3 = por %p1460_p13, %p1459_p10 }
  0x5e   : > { %v1741_v26 = vld [vmem:[%s1884_s3] ss:$0 sm:$0xff] }
  0x5f   : > { %1250 = vmatpush3.bf16.msra.mxu0 %v1372_v2  ;;  %1303 = vmatpush3.bf16.msra.mxu1 %v1372_v2  ;;  %p1462_p7 = pnand %p1461_p3, %p1455_p8 }
  0x60   : > { %1251 = vmatprep.subr.bf16.mxu0 %v1373_v3  ;;  %1296 = vmatprep.subr.bf16.mxu1 %v1373_v3 }
  0x63   : > { %1252 = vmatpush3.bf16.msra.mxu0 %v1373_v3  ;;  %1304 = vmatpush3.bf16.msra.mxu1 %v1373_v3 }
  0x64   : > { %1253 = vmatprep.subr.bf16.mxu0 %v1374_v6  ;;  %1297 = vmatprep.subr.bf16.mxu1 %v1374_v6 }
  0x67   : > { %1254 = vmatpush3.bf16.msra.mxu0 %v1374_v6  ;;  %1305 = vmatpush3.bf16.msra.mxu1 %v1374_v6 }
  0x68   : > { %1255 = vmatprep.subr.bf16.mxu0 %v1375_v7  ;;  %1298 = vmatprep.subr.bf16.mxu1 %v1375_v7 }
  0x6b   : > { %1256 = vmatpush3.bf16.msra.mxu0 %v1375_v7  ;;  %1306 = vmatpush3.bf16.msra.mxu1 %v1375_v7 }
  0x6c   : > { %1257 = vmatprep.subr.bf16.mxu0 %v1376_v8  ;;  %1299 = vmatprep.subr.bf16.mxu1 %v1376_v8 }
  0x6f   : > { %1258 = vmatpush3.bf16.msra.mxu0 %v1376_v8  ;;  %1307 = vmatpush3.bf16.msra.mxu1 %v1376_v8 }
  0x70   : > { %1259 = vmatprep.subr.bf16.mxu0 %v1377_v9  ;;  %1300 = vmatprep.subr.bf16.mxu1 %v1377_v9 }
  0x73   : > { %1260 = vmatpush3.bf16.msra.mxu0 %v1377_v9  ;;  %1308 = vmatpush3.bf16.msra.mxu1 %v1377_v9 }
  0x76   : > { %1262 = vmatmul.mubr.bf16.vlgmr.msra.gmra.mrb[0].mxu0 %v1380_v10  ;;  %1278 = vmatmul.mubr.bf16.vlgmr.msra.gmra.mrb[0].mxu1 %v1381_v11 }
  0x77   : > { %1265 = vmatprep.mubr.bf16.mxu0 %v1382_v12  ;;  %1281 = vmatprep.mubr.bf16.mxu1 %v1383_v13 }
  0x7e   : > { %1266 = vmatmul.mubr.bf16.gmra.mrb[4].mxu0 %v1384_v14  ;;  %1282 = vmatmul.mubr.bf16.gmra.mrb[4].mxu1 %v1385_v15 }
  0x7f   : > { %1269 = vmatprep.mubr.bf16.mxu0 %v1386_v16  ;;  %1285 = vmatprep.mubr.bf16.mxu1 %v1387_v17 }
  0x86   : > { %1270 = vmatmul.mubr.bf16.gmra.mrb[8].mxu0 %v1388_v18  ;;  %1286 = vmatmul.mubr.bf16.gmra.mrb[8].mxu1 %v1389_v19 }
  0x87   : > { %1273 = vmatprep.mubr.bf16.mxu0 %v1390_v20  ;;  %1289 = vmatprep.mubr.bf16.mxu1 %v1391_v21 }
  0x8e   : > { %1274 = vmatmul.mubr.bf16.gmra.mrb[12].mxu0 %v1392_v22  ;;  %1290 = vmatmul.mubr.bf16.gmra.mrb[12].mxu1 %v1393_v23 }
 0x149   : > { %v1263_v25 = vpop.f32.mrb[0].mxu0  ;;  %v1279_v27 = vpop.f32.mrb[0].mxu1 }
 0x14a   : > { %v596_v28 = vmul.f32 %v1263_v25, %v1736_v24  ;;  %v612_v29 = vmul.f32 %v1279_v27, %v1736_v24  ;;  %v460_v30 = vpop.f32.mrb[1].mxu0  ;;  %v524_v31 = vpop.f32.mrb[1].mxu1 }
 0x14b   : > { %v594_v32 = vmul.f32 %v1736_v24, %v460_v30  ;;  %v610_v33 = vmul.f32 %v1736_v24, %v524_v31  ;;  %v1264_v34 = vpop.f32.mrb[2].mxu0  ;;  %v1280_v35 = vpop.f32.mrb[2].mxu1 }
 0x14c   : > { %v635_v36 = vadd.f32 %v1741_v26, %v596_v28  ;;  %v651_v37 = vadd.f32 %v1741_v26, %v612_v29  ;;  %v597_v38 = vmul.f32 %v1264_v34, %v1736_v24  ;;  %v613_v39 = vmul.f32 %v1280_v35, %v1736_v24  ;;  %v463_v40 = vpop.f32.mrb[3].mxu0  ;;  %v527_v41 = vpop.f32.mrb[3].mxu1 }
 0x14d   : > { %v633_v42 = vadd.f32 %v1741_v26, %v594_v32  ;;  %v649_v43 = vadd.f32 %v1741_v26, %v610_v33  ;;  %v595_v44 = vmul.f32 %v1736_v24, %v463_v40  ;;  %v611_v45 = vmul.f32 %v1736_v24, %v527_v41 }
 0x14e   : > { %vm667_vm0 = vcmp.gt.f32.partialorder %v635_v36, 0.0  ;;  %v699_v46 = vmul.f32 0.01, %v635_v36  ;;  %vm683_vm1 = vcmp.gt.f32.partialorder %v651_v37, 0.0  ;;  %v715_v47 = vmul.f32 0.01, %v651_v37 }
 0x14f   : > { %vm665_vm2 = vcmp.gt.f32.partialorder %v633_v42, 0.0  ;;  %v697_v48 = vmul.f32 0.01, %v633_v42  ;;  %vm681_vm3 = vcmp.gt.f32.partialorder %v649_v43, 0.0  ;;  %v713_v49 = vmul.f32 0.01, %v649_v43 }
 0x150   : > { %v731_v50 = vsel %vm667_vm0, %v635_v36, %v699_v46  ;;  %v747_v51 = vsel %vm683_vm1, %v651_v37, %v715_v47  ;;  %v636_v52 = vadd.f32 %v1741_v26, %v597_v38  ;;  %v652_v53 = vadd.f32 %v1741_v26, %v613_v39 }
 0x151   : > { %v729_v54 = vsel %vm665_vm2, %v633_v42, %v697_v48  ;;  %v745_v55 = vsel %vm681_vm3, %v649_v43, %v713_v49  ;;  %v634_v56 = vadd.f32 %v1741_v26, %v595_v44  ;;  %v650_v57 = vadd.f32 %v1741_v26, %v611_v45  ;;  %v1267_v58 = vpop.f32.mrb[4].mxu0  ;;  %v1283_v59 = vpop.f32.mrb[4].mxu1 }
 0x152   : > { %vm668_vm4 = vcmp.gt.f32.partialorder %v636_v52, 0.0  ;;  %v700_v60 = vmul.f32 0.01, %v636_v52  ;;  %vm684_vm5 = vcmp.gt.f32.partialorder %v652_v53, 0.0  ;;  %v716_v61 = vmul.f32 0.01, %v652_v53 }
 0x153   : > { %vm666_vm6 = vcmp.gt.f32.partialorder %v634_v56, 0.0  ;;  %v698_v62 = vmul.f32 0.01, %v634_v56  ;;  %vm682_vm7 = vcmp.gt.f32.partialorder %v650_v57, 0.0  ;;  %v714_v63 = vmul.f32 0.01, %v650_v57 }
 0x154   : > { %v732_v0 = vsel %vm668_vm4, %v636_v52, %v700_v60  ;;  %v748_v1 = vsel %vm684_vm5, %v652_v53, %v716_v61  ;;  %v600_v2 = vmul.f32 %v1267_v58, %v1736_v24  ;;  %v616_v3 = vmul.f32 %v1283_v59, %v1736_v24  ;;  %v476_v4 = vpop.f32.mrb[5].mxu0  ;;  %v540_v5 = vpop.f32.mrb[5].mxu1 }
 0x155   : > { %v1134_v6 = vpack.c.bf16 %v732_v0, %v731_v50  ;;  %v1174_v7 = vpack.c.bf16 %v748_v1, %v747_v51  ;;  %v730_v8 = vsel %vm666_vm6, %v634_v56, %v698_v62  ;;  %v746_v9 = vsel %vm682_vm7, %v650_v57, %v714_v63  ;;  %v1268_v10 = vpop.f32.mrb[6].mxu0  ;;  %v1284_v11 = vpop.f32.mrb[6].mxu1 }
 0x156   : > { %v1129_v12 = vpack.c.bf16 %v730_v8, %v729_v54  ;;  %v1169_v13 = vpack.c.bf16 %v746_v9, %v745_v55  ;;  %v639_v14 = vadd.f32 %v1741_v26, %v600_v2  ;;  %v655_v15 = vadd.f32 %v1741_v26, %v616_v3  ;;  %v479_v16 = vpop.f32.mrb[7].mxu0  ;;  %v543_v17 = vpop.f32.mrb[7].mxu1 }
 0x157   : > { %1206 = vst [vmem:[%s1765_s9 + $0x8] sm:$0xff] %v1134_v6   ;;  %1214 = vst [vmem:[%s1765_s9 + $0x48] sm:$0xff] %v1174_v7   ;;  %v598_v18 = vmul.f32 %v1736_v24, %v476_v4  ;;  %v614_v19 = vmul.f32 %v1736_v24, %v540_v5  ;;  %v601_v20 = vmul.f32 %v1268_v10, %v1736_v24 }
 0x158   : > { %v617_v21 = vmul.f32 %v1284_v11, %v1736_v24  ;;  %1130 = vst [vmem:[%s1765_s9] sm:$0xff] %v1129_v12   ;;  %1213 = vst [vmem:[%s1765_s9 + $0x40] sm:$0xff] %v1169_v13   ;;  %vm671_vm8 = vcmp.gt.f32.partialorder %v639_v14, 0.0  ;;  %v703_v22 = vmul.f32 0.01, %v639_v14  ;;  %vm687_vm9 = vcmp.gt.f32.partialorder %v655_v15, 0.0 }
 0x159   : > { %v719_v23 = vmul.f32 0.01, %v655_v15  ;;  %v637_v25 = vadd.f32 %v1741_v26, %v598_v18  ;;  %v653_v27 = vadd.f32 %v1741_v26, %v614_v19  ;;  %v640_v28 = vadd.f32 %v1741_v26, %v601_v20  ;;  %v1271_v30 = vpop.f32.mrb[8].mxu0  ;;  %v1287_v31 = vpop.f32.mrb[8].mxu1 }
 0x15a   : > { %v656_v29 = vadd.f32 %v1741_v26, %v617_v21  ;;  %v735_v32 = vsel %vm671_vm8, %v639_v14, %v703_v22  ;;  %v599_v34 = vmul.f32 %v1736_v24, %v479_v16  ;;  %v615_v35 = vmul.f32 %v1736_v24, %v543_v17  ;;  %v492_v36 = vpop.f32.mrb[9].mxu0  ;;  %v556_v37 = vpop.f32.mrb[9].mxu1 }
 0x15b   : > { %v751_v33 = vsel %vm687_vm9, %v655_v15, %v719_v23  ;;  %vm669_vm10 = vcmp.gt.f32.partialorder %v637_v25, 0.0  ;;  %v701_v38 = vmul.f32 0.01, %v637_v25  ;;  %vm685_vm11 = vcmp.gt.f32.partialorder %v653_v27, 0.0  ;;  %v1272_v46 = vpop.f32.mrb[10].mxu0  ;;  %v1288_v47 = vpop.f32.mrb[10].mxu1 }
 0x15c   : > { %v717_v39 = vmul.f32 0.01, %v653_v27  ;;  %vm672_vm12 = vcmp.gt.f32.partialorder %v640_v28, 0.0  ;;  %v704_v40 = vmul.f32 0.01, %v640_v28  ;;  %vm688_vm13 = vcmp.gt.f32.partialorder %v656_v29, 0.0 }
 0x15d   : > { %v720_v41 = vmul.f32 0.01, %v656_v29  ;;  %v733_v42 = vsel %vm669_vm10, %v637_v25, %v701_v38  ;;  %v638_v44 = vadd.f32 %v1741_v26, %v599_v34  ;;  %v654_v45 = vadd.f32 %v1741_v26, %v615_v35  ;;  %v495_v52 = vpop.f32.mrb[11].mxu0  ;;  %v559_v53 = vpop.f32.mrb[11].mxu1 }
 0x15e   : > { %v749_v43 = vsel %vm685_vm11, %v653_v27, %v717_v39  ;;  %v736_v48 = vsel %vm672_vm12, %v640_v28, %v704_v40  ;;  %v604_v50 = vmul.f32 %v1271_v30, %v1736_v24  ;;  %v620_v51 = vmul.f32 %v1287_v31, %v1736_v24 }
 0x15f   : > { %v752_v49 = vsel %vm688_vm13, %v656_v29, %v720_v41  ;;  %v1144_v54 = vpack.c.bf16 %v736_v48, %v735_v32  ;;  %vm670_vm14 = vcmp.gt.f32.partialorder %v638_v44, 0.0  ;;  %v702_v56 = vmul.f32 0.01, %v638_v44 }
 0x160   : > { %v1184_v55 = vpack.c.bf16 %v752_v49, %v751_v33  ;;  %vm686_vm15 = vcmp.gt.f32.partialorder %v654_v45, 0.0  ;;  %v718_v57 = vmul.f32 0.01, %v654_v45  ;;  %v643_v58 = vadd.f32 %v1741_v26, %v604_v50 }
 0x161   : > { %v659_v59 = vadd.f32 %v1741_v26, %v620_v51  ;;  %1208 = vst [vmem:[%s1765_s9 + $0x18] sm:$0xff] %v1144_v54   ;;  %v734_v60 = vsel %vm670_vm14, %v638_v44, %v702_v56  ;;  %v602_v61 = vmul.f32 %v1736_v24, %v492_v36  ;;  %v618_v62 = vmul.f32 %v1736_v24, %v556_v37  ;;  %v1275_v0 = vpop.f32.mrb[12].mxu0  ;;  %v1291_v1 = vpop.f32.mrb[12].mxu1 }
 0x162   : > { %1216 = vst [vmem:[%s1765_s9 + $0x58] sm:$0xff] %v1184_v55   ;;  %v605_v63 = vmul.f32 %v1272_v46, %v1736_v24  ;;  %v1139_v2 = vpack.c.bf16 %v734_v60, %v733_v42  ;;  %v750_v3 = vsel %vm686_vm15, %v654_v45, %v718_v57  ;;  %vm675_vm0 = vcmp.gt.f32.partialorder %v643_v58, 0.0  ;;  %v508_v5 = vpop.f32.mrb[13].mxu0  ;;  %v572_v6 = vpop.f32.mrb[13].mxu1 }
 0x163   : > { %v707_v4 = vmul.f32 0.01, %v643_v58  ;;  %v1179_v7 = vpack.c.bf16 %v750_v3, %v749_v43  ;;  %vm691_vm1 = vcmp.gt.f32.partialorder %v659_v59, 0.0  ;;  %v723_v8 = vmul.f32 0.01, %v659_v59  ;;  %v1276_v10 = vpop.f32.mrb[14].mxu0 }
 0x164   : > { %v641_v9 = vadd.f32 %v1741_v26, %v602_v61  ;;  %v1292_v11 = vpop.f32.mrb[14].mxu1  ;;  %1207 = vst [vmem:[%s1765_s9 + $0x10] sm:$0xff] %v1139_v2   ;;  %v657_v12 = vadd.f32 %v1741_v26, %v618_v62  ;;  %v644_v13 = vadd.f32 %v1741_v26, %v605_v63  ;;  %v621_v14 = vmul.f32 %v1288_v47, %v1736_v24  ;;  %v511_v15 = vpop.f32.mrb[15].mxu0 }
 0x165   : > { %v575_v16 = vpop.f32.mrb[15].mxu1  ;;  %1215 = vst [vmem:[%s1765_s9 + $0x50] sm:$0xff] %v1179_v7   ;;  %v739_v17 = vsel %vm675_vm0, %v643_v58, %v707_v4  ;;  %v755_v18 = vsel %vm691_vm1, %v659_v59, %v723_v8  ;;  %v603_v19 = vmul.f32 %v1736_v24, %v495_v52  ;;  %v619_v25 = vmul.f32 %v1736_v24, %v559_v53 }
 0x166   : > { %vm673_vm2 = vcmp.gt.f32.partialorder %v641_v9, 0.0  ;;  %v705_v20 = vmul.f32 0.01, %v641_v9  ;;  %vm676_vm3 = vcmp.gt.f32.partialorder %v644_v13, 0.0  ;;  %v708_v21 = vmul.f32 0.01, %v644_v13 }
 0x167   : > { %vm689_vm4 = vcmp.gt.f32.partialorder %v657_v12, 0.0  ;;  %v660_v22 = vadd.f32 %v1741_v26, %v621_v14  ;;  %v642_v23 = vadd.f32 %v1741_v26, %v603_v19  ;;  %v721_v27 = vmul.f32 0.01, %v657_v12 }
 0x168   : > { %v740_v28 = vsel %vm676_vm3, %v644_v13, %v708_v21  ;;  %v608_v29 = vmul.f32 %v1275_v0, %v1736_v24  ;;  %v624_v30 = vmul.f32 %v1291_v1, %v1736_v24  ;;  %v737_v33 = vsel %vm673_vm2, %v641_v9, %v705_v20 }
 0x169   : > { %v1154_v31 = vpack.c.bf16 %v740_v28, %v739_v17  ;;  %vm692_vm5 = vcmp.gt.f32.partialorder %v660_v22, 0.0  ;;  %v724_v32 = vmul.f32 0.01, %v660_v22  ;;  %vm674_vm6 = vcmp.gt.f32.partialorder %v642_v23, 0.0 }
 0x16a   : > { %v706_v34 = vmul.f32 0.01, %v642_v23  ;;  %v658_v35 = vadd.f32 %v1741_v26, %v619_v25  ;;  %v647_v36 = vadd.f32 %v1741_v26, %v608_v29  ;;  %v663_v38 = vadd.f32 %v1741_v26, %v624_v30 }
 0x16b   : > { %1210 = vst [vmem:[%s1765_s9 + $0x28] sm:$0xff] %v1154_v31   ;;  %v756_v37 = vsel %vm692_vm5, %v660_v22, %v724_v32  ;;  %v606_v39 = vmul.f32 %v1736_v24, %v508_v5  ;;  %v609_v40 = vmul.f32 %v1276_v10, %v1736_v24  ;;  %v622_v45 = vmul.f32 %v1736_v24, %v572_v6 }
 0x16c   : > { %v1194_v41 = vpack.c.bf16 %v756_v37, %v755_v18  ;;  %v738_v42 = vsel %vm674_vm6, %v642_v23, %v706_v34  ;;  %vm690_vm7 = vcmp.gt.f32.partialorder %v658_v35, 0.0  ;;  %v722_v43 = vmul.f32 0.01, %v658_v35 }
 0x16d   : > { %v1149_v44 = vpack.c.bf16 %v738_v42, %v737_v33  ;;  %v753_v46 = vsel %vm689_vm4, %v657_v12, %v721_v27  ;;  %vm679_vm8 = vcmp.gt.f32.partialorder %v647_v36, 0.0  ;;  %v711_v48 = vmul.f32 0.01, %v647_v36 }
 0x16e   : > { %1218 = vst [vmem:[%s1765_s9 + $0x68] sm:$0xff] %v1194_v41   ;;  %v754_v47 = vsel %vm690_vm7, %v658_v35, %v722_v43  ;;  %v727_v50 = vmul.f32 0.01, %v663_v38  ;;  %v648_v51 = vadd.f32 %v1741_v26, %v609_v40  ;;  %v625_v52 = vmul.f32 %v1292_v11, %v1736_v24 }
 0x16f   : > { %1209 = vst [vmem:[%s1765_s9 + $0x20] sm:$0xff] %v1149_v44   ;;  %v1189_v49 = vpack.c.bf16 %v754_v47, %v753_v46  ;;  %vm695_vm9 = vcmp.gt.f32.partialorder %v663_v38, 0.0  ;;  %v645_v53 = vadd.f32 %v1741_v26, %v606_v39  ;;  %v661_v54 = vadd.f32 %v1741_v26, %v622_v45 }
 0x170   : > { %vm680_vm10 = vcmp.gt.f32.partialorder %v648_v51, 0.0  ;;  %v712_v55 = vmul.f32 0.01, %v648_v51  ;;  %v664_v56 = vadd.f32 %v1741_v26, %v625_v52  ;;  %v743_v57 = vsel %vm679_vm8, %v647_v36, %v711_v48 }
 0x171   : > { %1217 = vst [vmem:[%s1765_s9 + $0x60] sm:$0xff] %v1189_v49   ;;  %v607_v58 = vmul.f32 %v1736_v24, %v511_v15  ;;  %v623_v59 = vmul.f32 %v1736_v24, %v575_v16  ;;  %v759_v60 = vsel %vm695_vm9, %v663_v38, %v727_v50  ;;  %v709_v63 = vmul.f32 0.01, %v645_v53 }
 0x172   : > { %v744_v61 = vsel %vm680_vm10, %v648_v51, %v712_v55  ;;  %vm696_vm11 = vcmp.gt.f32.partialorder %v664_v56, 0.0  ;;  %v728_v62 = vmul.f32 0.01, %v664_v56  ;;  %vm677_vm12 = vcmp.gt.f32.partialorder %v645_v53, 0.0 }
 0x173   : > { %v1164_v0 = vpack.c.bf16 %v744_v61, %v743_v57  ;;  %v646_v1 = vadd.f32 %v1741_v26, %v607_v58  ;;  %v662_v2 = vadd.f32 %v1741_v26, %v623_v59  ;;  %vm693_vm13 = vcmp.gt.f32.partialorder %v661_v54, 0.0 }
 0x174   : > { %v725_v3 = vmul.f32 0.01, %v661_v54  ;;  %v760_v4 = vsel %vm696_vm11, %v664_v56, %v728_v62  ;;  %v741_v7 = vsel %vm677_vm12, %v645_v53, %v709_v63 }
 0x175   : > { %1212 = vst [vmem:[%s1765_s9 + $0x38] sm:$0xff] %v1164_v0   ;;  %v1204_v5 = vpack.c.bf16 %v760_v4, %v759_v60  ;;  %vm678_vm14 = vcmp.gt.f32.partialorder %v646_v1, 0.0  ;;  %v710_v24 = vmul.f32 0.01, %v646_v1  ;;  %vm694_vm15 = vcmp.gt.f32.partialorder %v662_v2, 0.0 }
 0x176   : > { %v726_v6 = vmul.f32 0.01, %v662_v2  ;;  %v757_v26 = vsel %vm693_vm13, %v661_v54, %v725_v3 }
 0x177   : > { %1220 = vst [vmem:[%s1765_s9 + $0x78] sm:$0xff] %v1204_v5   ;;  %v742_v8 = vsel %vm678_vm14, %v646_v1, %v710_v24 }
 0x178   : > { %v1159_v9 = vpack.c.bf16 %v742_v8, %v741_v7  ;;  %v758_v10 = vsel %vm694_vm15, %v662_v2, %v726_v6 }
 0x179   : > { %v1199_v11 = vpack.c.bf16 %v758_v10, %v757_v26 }
 0x17a   : > { %1211 = vst [vmem:[%s1765_s9 + $0x30] sm:$0xff] %v1159_v9  }
 0x17b   : > { %1219 = vst [vmem:[%s1765_s9 + $0x70] sm:$0xff] %v1199_v11  }
 0x17c   : > { %1465 = shalt.err (!%p1462_p7)
}
 0x17d   : > { %s1466_s5 = scalar_lea.hbm %s1833_s26, 2048  ;;  %s1470_s23 = scalar_lea.hbm %s1885_s4, 4096 }
 0x17e   : > { %p1467_p9 = scmp.ne.s32.totalorder %s1833_s26, %s1466_s5  ;;  %p1471_p5 = scmp.lt.u32.totalorder %s1833_s26, %s1885_s4 }
 0x17f   : > { %p1472_p11 = scmp.lt.u32.totalorder %s1470_s23, %s1466_s5  ;;  %p1474_p4 = scmp.lt.u32.totalorder %s1466_s5, %s1833_s26 }
 0x180   : > { %p1468_p1 = pnand %p1467_p9, %p1650_p12 }
 0x181   : > { %p1473_p2 = por %p1472_p11, %p1471_p5 }
 0x182   : > { %p1469_p0 = pneg %p1468_p1 }
 0x183   : > { %p1475_p6 = por %p1474_p4, %p1473_p2 }
 0x185   : > { %p1476_p8 = pnand %p1475_p6, %p1469_p0 }
 0x187   : > { %1479 = shalt.err (!%p1476_p8)
}
 0x188   : > { %s1529_s9 = smov 64   ;;  %s1530_s28 = smov 4  }
 0x189   : > { %1315 = dma.vmem_to_hbm [thread:$0]  (%p1650_p12), %s1835_s10, 2048, %s1833_s26, %s922_s19, %s1529_s9, %s1529_s9, %s1530_s28  }
 0x18a PF: > { %s950_s6 = sand.u32 1, %s1510_s15   ;;  %p1900_p10 = scmp.ne.s32.totalorder %s1890_s22, 0 }
 0x18b   : > { %p1901_p13 = scmp.ge.s32.totalorder %s1522_s18, 2  ;;  %s951_s7 = scalar_lea.sflag [#allocation4], %s950_s6 }
 0x18d   : > { %p1326_p3 = pnand %p1901_p13, %p1900_p10 }
 0x18f   : > { %1505 = dma.done.wait (!%p1326_p3), %s951_s7, 2048  }
 0x190   : > { %1507 = vsyncadd (!%p1326_p3), %s951_s7, 4294965248  ;;  %p18_p7 = scmp.ge.s32.totalorder %s1612_s27, 4   ;;  %s1902_s15 = smov %s1514_s16 }
 0x191   : > { %s1903_s16 = smov %s1518_s17  ;;  %s1904_s17 = smov %s1646_s24 }
 0x192   : > { %s1905_s18 = smov %s1612_s27  ;;  %20 = sbr.rel (!%p18_p7) target bundleno = 6 (0x6), region = 85 }
 0x199   :  { %956 = vsyncpa [#allocation3], 1 }
 0x19a   :  { %958 = vsyncpa [#allocation3 + $0x1], 1 }
 0x19b   :  { %959 = vsyncpa [#allocation6], 1 }
 0x19c   :  { %960 = vsyncpa [#allocation4], 1 }
 0x19d   :  { %962 = vsyncpa [#allocation4 + $0x1], 1 }

</bundles_post_ra>
